<compile_context>
chip_gen: v5e
topology: v5e:2x2
jax: 0.10.0
libtpu: 0.0.40
codegen_flags: <defaults>
</compile_context>

<pallas_src>
import functools

import jax
import jax.numpy as jnp
from jax.experimental import pallas as pl
from jax.experimental.pallas import tpu as pltpu


def _resblock_kernel(x_ref, mask_ref, w_ref, b_ref, out_ref, slab_ref,
                     *, K, P, W, HW):
    """One image-pair per grid step.

    x_ref   : (1, 2C, HW)        two images stacked along channels (+ residual)
    mask_ref: (K*K, 1, HW)       per-tap boundary masks (sublane-broadcast)
    w_ref   : (3, 2C, K*K*2C)    bf16 block-diagonal weights, tap-major columns
    b_ref   : (3, 2C, 1)         f32 biases (each image's bias repeated)
    out_ref : (1, 2C, HW)
    slab_ref: (K*K*2C, HW)       f32 VMEM scratch holding the im2col slab
    """
    C2 = out_ref.shape[1]                      # 2 * C  (== 8 for C=4)

    def conv(a, layer):
        # a: (2C, HW) f32 activation.  Build the (K*K*2C, HW) im2col slab with
        # lane rolls + masks (aligned 8-row stores), then a single wide MXU
        # contraction in bf16 with f32 accumulation.
        for kh in range(K):
            for kw in range(K):
                t = kh * K + kw
                d = (kh - P) * W + (kw - P)    # flat source offset
                if d == 0:
                    v = a                      # center tap: no shift / mask
                else:
                    # out[:, i] = a[:, i + d]  (wrap-around killed by the mask)
                    v = pltpu.roll(a, shift=(-d) % HW, axis=1)
                    v = v * mask_ref[t]        # (1, HW) sublane-broadcast
                slab_ref[t * C2:(t + 1) * C2, :] = v     # full-tile f32 store
        acc = jnp.dot(w_ref[layer],                       # (2C, K*K*2C) bf16
                      slab_ref[...].astype(jnp.bfloat16),  # (K*K*2C, HW) bf16
                      preferred_element_type=jnp.float32)  # (2C, HW) f32
        return acc + b_ref[layer]               # (2C, 1) lane-broadcast bias

    h = jnp.maximum(conv(x_ref[0], 0), 0.0)
    h = jnp.maximum(conv(h, 1), 0.0)
    h = conv(h, 2) + x_ref[0]                   # residual read deferred
    out_ref[0] = jnp.maximum(h, 0.0).astype(out_ref.dtype)


def resblock_pallas(x_nchw, params, kernel_size):
    """x_nchw: (B, C, H, W) float32 — same convention as the PyTorch module."""
    (w1, b1), (w2, b2), (w3, b3) = params
    B, C, H, W = x_nchw.shape
    K = kernel_size
    P = (K - 1) // 2
    HW = H * W

    # Pad batch to an even count so images pack in pairs along sublanes.
    Bp = B + (B % 2)
    if Bp != B:
        pad = jnp.zeros((Bp - B, C, H, W), x_nchw.dtype)
        x_nchw = jnp.concatenate([x_nchw, pad], axis=0)
    pairs = Bp // 2
    C2 = 2 * C
    KKC2 = K * K * C2

    # Free (row-major) reshape: (Bp, C, H, W) -> (pairs, 2C, H*W).
    x_flat = x_nchw.reshape(pairs, C2, HW)

    # PyTorch conv weight (Cout, Cin, kh, kw) -> block-diagonal (2C, K*K*2C),
    # tap-major columns, matching the slab row order (tap, then 2C channels).
    def tw2(w):
        wt = jnp.transpose(w, (2, 3, 0, 1)).reshape(K * K, C, C)   # (KK, co, ci)
        z = jnp.zeros_like(wt)
        top = jnp.concatenate([wt, z], axis=2)                     # (KK, C, 2C)
        bot = jnp.concatenate([z, wt], axis=2)                     # (KK, C, 2C)
        big = jnp.concatenate([top, bot], axis=1)                  # (KK, 2C, 2C)
        return jnp.transpose(big, (1, 0, 2)).reshape(C2, KKC2)

    w_all = jnp.stack([tw2(w1), tw2(w2), tw2(w3)], axis=0).astype(jnp.bfloat16)
    b_all = jnp.stack(
        [jnp.concatenate([b, b]).reshape(C2, 1) for b in (b1, b2, b3)],
        axis=0).astype(jnp.float32)                                # (3, 2C, 1)

    # Per-tap validity masks over flattened positions, NOT broadcast over
    # channels (sublane broadcast happens for free inside the kernel).
    ys = jnp.arange(H)
    xs = jnp.arange(W)
    rows = []
    for kh in range(K):
        for kw in range(K):
            dy, dx = kh - P, kw - P
            my = ((ys + dy) >= 0) & ((ys + dy) < H)
            mx = ((xs + dx) >= 0) & ((xs + dx) < W)
            rows.append((my[:, None] & mx[None, :]).reshape(HW))
    masks = jnp.stack(rows, axis=0).astype(jnp.float32)[:, None, :]  # (KK,1,HW)

    kern = functools.partial(_resblock_kernel, K=K, P=P, W=W, HW=HW)

    # VMEM budget computed from the actual buffers (+ double-buffering),
    # with a generous headroom factor and a safe floor.
    slab_bytes = KKC2 * HW * 4
    io_bytes = 2 * (2 * C2 * HW * 4)                # in + out blocks, x2 buffers
    const_bytes = 3 * C2 * KKC2 * 2 + 3 * C2 * 4 + K * K * HW * 4
    needed = slab_bytes + io_bytes + const_bytes
    vmem_limit = int(min(100 * 2**20, max(16 * 2**20, 4 * needed)))

    out_flat = pl.pallas_call(
        kern,
        out_shape=jax.ShapeDtypeStruct((pairs, C2, HW), x_nchw.dtype),
        grid_spec=pltpu.PrefetchScalarGridSpec(
            num_scalar_prefetch=0,
            grid=(pairs,),
            in_specs=[
                pl.BlockSpec((1, C2, HW), lambda b: (b, 0, 0)),
                pl.BlockSpec((K * K, 1, HW), lambda b: (0, 0, 0)),
                pl.BlockSpec((3, C2, KKC2), lambda b: (0, 0, 0)),
                pl.BlockSpec((3, C2, 1), lambda b: (0, 0, 0)),
            ],
            out_specs=pl.BlockSpec((1, C2, HW), lambda b: (b, 0, 0)),
            scratch_shapes=[pltpu.VMEM((KKC2, HW), jnp.float32)],
        ),
        compiler_params=pltpu.CompilerParams(
            dimension_semantics=("parallel",),
            vmem_limit_bytes=vmem_limit,
        ),
    )(x_flat, masks, w_all, b_all)

    # Free reshape back to NCHW; drop any batch padding.
    return out_flat.reshape(Bp, C, H, W)[:B]


def _reference_resblock(x, params, kernel_size):
    """Pure-JAX reference (mirrors the PyTorch forward) for verification."""
    P = (kernel_size - 1) // 2

    def conv(x, w, b):
        out = jax.lax.conv_general_dilated(
            x, w, window_strides=(1, 1), padding=[(P, P), (P, P)],
            dimension_numbers=('NCHW', 'OIHW', 'NCHW'))
        return out + b[None, :, None, None]

    (w1, b1), (w2, b2), (w3, b3) = params
    out = jax.nn.relu(conv(x, w1, b1))
    out = jax.nn.relu(conv(out, w2, b2))
    out = conv(out, w3, b3) + x
    return jax.nn.relu(out)


if __name__ == "__main__":
    # Small shapes consistent with the module: ResBlock(kernel_size=3, in_feats=4)
    B, C, H, W = 2, 4, 16, 16
    K = 3

    key = jax.random.PRNGKey(0)
    keys = jax.random.split(key, 7)
    x = jax.random.normal(keys[0], (B, C, H, W), jnp.float32)

    # Deterministic parameter init (Conv2d: weight (Cout, Cin, K, K), bias (Cout,))
    def init_conv(kw, kb):
        bound = 1.0 / (C * K * K) ** 0.5
        w = jax.random.uniform(kw, (C, C, K, K), jnp.float32, -bound, bound)
        b = jax.random.uniform(kb, (C,), jnp.float32, -bound, bound)
        return w, b

    params = (init_conv(keys[1], keys[2]),
              init_conv(keys[3], keys[4]),
              init_conv(keys[5], keys[6]))

    out = resblock_pallas(x, params, K)
    out = jax.block_until_ready(out)

    ref = _reference_resblock(x, params, K)
    assert out.shape == (B, C, H, W)
    # bf16 MXU operands (f32 accumulation) -> loosened tolerance vs f32 ref.
    assert jnp.allclose(out, ref, atol=5e-2, rtol=5e-2), (
        f"max abs err = {jnp.max(jnp.abs(out - ref))}")

    print("KERNEL_OK")
</pallas_src>

<mosaic_0001>
module attributes {stable_mosaic.version = 11 : i64} {
  func.func @_resblock_kernel(%arg0: i32, %arg1: memref<1x8x256xf32, #tpu.memory_space<vmem>>, %arg2: memref<9x1x256xf32, #tpu.memory_space<vmem>>, %arg3: memref<3x8x72xbf16, #tpu.memory_space<vmem>>, %arg4: memref<3x8x1xf32, #tpu.memory_space<vmem>>, %arg5: memref<1x8x256xf32, #tpu.memory_space<vmem>>, %arg6: memref<72x256xf32, #tpu.memory_space<vmem>>) attributes {dimension_semantics = [#tpu.dimension_semantics<parallel>], iteration_bounds = array<i64: 1>, scalar_prefetch = 0 : i64, scratch_operands = 1 : i64, tpu.core_type = #tpu.core_type<tc>, window_params = [{transform_indices = @transform_0, window_bounds = array<i64: 1, 8, 256>}, {pipeline_mode = #tpu.pipeline_mode<synchronous>, transform_indices = @transform_1, window_bounds = array<i64: 9, 1, 256>}, {pipeline_mode = #tpu.pipeline_mode<synchronous>, transform_indices = @transform_2, window_bounds = array<i64: 3, 8, 72>}, {pipeline_mode = #tpu.pipeline_mode<synchronous>, transform_indices = @transform_3, window_bounds = array<i64: 3, 8, 1>}, {transform_indices = @transform_4, window_bounds = array<i64: 1, 8, 256>}]} {
    %c0 = arith.constant 0 : index
    %c0_0 = arith.constant 0 : index
    %c0_1 = arith.constant 0 : index
    %0 = vector.load %arg1[%c0, %c0_0, %c0_1] : memref<1x8x256xf32, #tpu.memory_space<vmem>>, vector<1x8x256xf32>
    %1 = vector.shape_cast %0 : vector<1x8x256xf32> to vector<8x256xf32>
    %c17_i32 = arith.constant 17 : i32
    %2 = tpu.dynamic_rotate %1 by %c17_i32 dim 1 : vector<8x256xf32>, i32 -> vector<8x256xf32>
    %c0_2 = arith.constant 0 : index
    %c0_3 = arith.constant 0 : index
    %c0_4 = arith.constant 0 : index
    %3 = vector.load %arg2[%c0_2, %c0_3, %c0_4] : memref<9x1x256xf32, #tpu.memory_space<vmem>>, vector<1x1x256xf32>
    %4 = vector.shape_cast %3 : vector<1x1x256xf32> to vector<1x256xf32>
    %5 = vector.broadcast %4 : vector<1x256xf32> to vector<8x256xf32>
    %6 = arith.mulf %2, %5 : vector<8x256xf32>
    %c0_5 = arith.constant 0 : index
    %c0_6 = arith.constant 0 : index
    %7 = vector.load %arg6[%c0_5, %c0_6] : memref<72x256xf32, #tpu.memory_space<vmem>>, vector<8x256xf32>
    tpu.vector_store %arg6[%c0_5, %c0_6], %6 {strides = array<i32>} : memref<72x256xf32, #tpu.memory_space<vmem>>, vector<8x256xf32>,
    %c16_i32 = arith.constant 16 : i32
    %8 = tpu.dynamic_rotate %1 by %c16_i32 dim 1 : vector<8x256xf32>, i32 -> vector<8x256xf32>
    %c1 = arith.constant 1 : index
    %c0_7 = arith.constant 0 : index
    %c0_8 = arith.constant 0 : index
    %9 = vector.load %arg2[%c1, %c0_7, %c0_8] : memref<9x1x256xf32, #tpu.memory_space<vmem>>, vector<1x1x256xf32>
    %10 = vector.shape_cast %9 : vector<1x1x256xf32> to vector<1x256xf32>
    %11 = vector.broadcast %10 : vector<1x256xf32> to vector<8x256xf32>
    %12 = arith.mulf %8, %11 : vector<8x256xf32>
    %c8 = arith.constant 8 : index
    %c0_9 = arith.constant 0 : index
    %13 = vector.load %arg6[%c8, %c0_9] : memref<72x256xf32, #tpu.memory_space<vmem>>, vector<8x256xf32>
    tpu.vector_store %arg6[%c8, %c0_9], %12 {strides = array<i32>} : memref<72x256xf32, #tpu.memory_space<vmem>>, vector<8x256xf32>,
    %c15_i32 = arith.constant 15 : i32
    %14 = tpu.dynamic_rotate %1 by %c15_i32 dim 1 : vector<8x256xf32>, i32 -> vector<8x256xf32>
    %c2 = arith.constant 2 : index
    %c0_10 = arith.constant 0 : index
    %c0_11 = arith.constant 0 : index
    %15 = vector.load %arg2[%c2, %c0_10, %c0_11] : memref<9x1x256xf32, #tpu.memory_space<vmem>>, vector<1x1x256xf32>
    %16 = vector.shape_cast %15 : vector<1x1x256xf32> to vector<1x256xf32>
    %17 = vector.broadcast %16 : vector<1x256xf32> to vector<8x256xf32>
    %18 = arith.mulf %14, %17 : vector<8x256xf32>
    %c16 = arith.constant 16 : index
    %c0_12 = arith.constant 0 : index
    %19 = vector.load %arg6[%c16, %c0_12] : memref<72x256xf32, #tpu.memory_space<vmem>>, vector<8x256xf32>
    tpu.vector_store %arg6[%c16, %c0_12], %18 {strides = array<i32>} : memref<72x256xf32, #tpu.memory_space<vmem>>, vector<8x256xf32>,
    %c1_i32 = arith.constant 1 : i32
    %20 = tpu.dynamic_rotate %1 by %c1_i32 dim 1 : vector<8x256xf32>, i32 -> vector<8x256xf32>
    %c3 = arith.constant 3 : index
    %c0_13 = arith.constant 0 : index
    %c0_14 = arith.constant 0 : index
    %21 = vector.load %arg2[%c3, %c0_13, %c0_14] : memref<9x1x256xf32, #tpu.memory_space<vmem>>, vector<1x1x256xf32>
    %22 = vector.shape_cast %21 : vector<1x1x256xf32> to vector<1x256xf32>
    %23 = vector.broadcast %22 : vector<1x256xf32> to vector<8x256xf32>
    %24 = arith.mulf %20, %23 : vector<8x256xf32>
    %c24 = arith.constant 24 : index
    %c0_15 = arith.constant 0 : index
    %25 = vector.load %arg6[%c24, %c0_15] : memref<72x256xf32, #tpu.memory_space<vmem>>, vector<8x256xf32>
    tpu.vector_store %arg6[%c24, %c0_15], %24 {strides = array<i32>} : memref<72x256xf32, #tpu.memory_space<vmem>>, vector<8x256xf32>,
    %c32 = arith.constant 32 : index
    %c0_16 = arith.constant 0 : index
    %26 = vector.load %arg6[%c32, %c0_16] : memref<72x256xf32, #tpu.memory_space<vmem>>, vector<8x256xf32>
    tpu.vector_store %arg6[%c32, %c0_16], %1 {strides = array<i32>} : memref<72x256xf32, #tpu.memory_space<vmem>>, vector<8x256xf32>,
    %c255_i32 = arith.constant 255 : i32
    %27 = tpu.dynamic_rotate %1 by %c255_i32 dim 1 : vector<8x256xf32>, i32 -> vector<8x256xf32>
    %c5 = arith.constant 5 : index
    %c0_17 = arith.constant 0 : index
    %c0_18 = arith.constant 0 : index
    %28 = vector.load %arg2[%c5, %c0_17, %c0_18] : memref<9x1x256xf32, #tpu.memory_space<vmem>>, vector<1x1x256xf32>
    %29 = vector.shape_cast %28 : vector<1x1x256xf32> to vector<1x256xf32>
    %30 = vector.broadcast %29 : vector<1x256xf32> to vector<8x256xf32>
    %31 = arith.mulf %27, %30 : vector<8x256xf32>
    %c40 = arith.constant 40 : index
    %c0_19 = arith.constant 0 : index
    %32 = vector.load %arg6[%c40, %c0_19] : memref<72x256xf32, #tpu.memory_space<vmem>>, vector<8x256xf32>
    tpu.vector_store %arg6[%c40, %c0_19], %31 {strides = array<i32>} : memref<72x256xf32, #tpu.memory_space<vmem>>, vector<8x256xf32>,
    %c241_i32 = arith.constant 241 : i32
    %33 = tpu.dynamic_rotate %1 by %c241_i32 dim 1 : vector<8x256xf32>, i32 -> vector<8x256xf32>
    %c6 = arith.constant 6 : index
    %c0_20 = arith.constant 0 : index
    %c0_21 = arith.constant 0 : index
    %34 = vector.load %arg2[%c6, %c0_20, %c0_21] : memref<9x1x256xf32, #tpu.memory_space<vmem>>, vector<1x1x256xf32>
    %35 = vector.shape_cast %34 : vector<1x1x256xf32> to vector<1x256xf32>
    %36 = vector.broadcast %35 : vector<1x256xf32> to vector<8x256xf32>
    %37 = arith.mulf %33, %36 : vector<8x256xf32>
    %c48 = arith.constant 48 : index
    %c0_22 = arith.constant 0 : index
    %38 = vector.load %arg6[%c48, %c0_22] : memref<72x256xf32, #tpu.memory_space<vmem>>, vector<8x256xf32>
    tpu.vector_store %arg6[%c48, %c0_22], %37 {strides = array<i32>} : memref<72x256xf32, #tpu.memory_space<vmem>>, vector<8x256xf32>,
    %c240_i32 = arith.constant 240 : i32
    %39 = tpu.dynamic_rotate %1 by %c240_i32 dim 1 : vector<8x256xf32>, i32 -> vector<8x256xf32>
    %c7 = arith.constant 7 : index
    %c0_23 = arith.constant 0 : index
    %c0_24 = arith.constant 0 : index
    %40 = vector.load %arg2[%c7, %c0_23, %c0_24] : memref<9x1x256xf32, #tpu.memory_space<vmem>>, vector<1x1x256xf32>
    %41 = vector.shape_cast %40 : vector<1x1x256xf32> to vector<1x256xf32>
    %42 = vector.broadcast %41 : vector<1x256xf32> to vector<8x256xf32>
    %43 = arith.mulf %39, %42 : vector<8x256xf32>
    %c56 = arith.constant 56 : index
    %c0_25 = arith.constant 0 : index
    %44 = vector.load %arg6[%c56, %c0_25] : memref<72x256xf32, #tpu.memory_space<vmem>>, vector<8x256xf32>
    tpu.vector_store %arg6[%c56, %c0_25], %43 {strides = array<i32>} : memref<72x256xf32, #tpu.memory_space<vmem>>, vector<8x256xf32>,
    %c239_i32 = arith.constant 239 : i32
    %45 = tpu.dynamic_rotate %1 by %c239_i32 dim 1 : vector<8x256xf32>, i32 -> vector<8x256xf32>
    %c8_26 = arith.constant 8 : index
    %c0_27 = arith.constant 0 : index
    %c0_28 = arith.constant 0 : index
    %46 = vector.load %arg2[%c8_26, %c0_27, %c0_28] : memref<9x1x256xf32, #tpu.memory_space<vmem>>, vector<1x1x256xf32>
    %47 = vector.shape_cast %46 : vector<1x1x256xf32> to vector<1x256xf32>
    %48 = vector.broadcast %47 : vector<1x256xf32> to vector<8x256xf32>
    %49 = arith.mulf %45, %48 : vector<8x256xf32>
    %c64 = arith.constant 64 : index
    %c0_29 = arith.constant 0 : index
    %50 = vector.load %arg6[%c64, %c0_29] : memref<72x256xf32, #tpu.memory_space<vmem>>, vector<8x256xf32>
    tpu.vector_store %arg6[%c64, %c0_29], %49 {strides = array<i32>} : memref<72x256xf32, #tpu.memory_space<vmem>>, vector<8x256xf32>,
    %c0_30 = arith.constant 0 : index
    %c0_31 = arith.constant 0 : index
    %c0_32 = arith.constant 0 : index
    %51 = vector.load %arg3[%c0_30, %c0_31, %c0_32] : memref<3x8x72xbf16, #tpu.memory_space<vmem>>, vector<1x8x72xbf16>
    %52 = vector.shape_cast %51 : vector<1x8x72xbf16> to vector<8x72xbf16>
    %c0_33 = arith.constant 0 : index
    %c0_34 = arith.constant 0 : index
    %53 = vector.load %arg6[%c0_33, %c0_34] : memref<72x256xf32, #tpu.memory_space<vmem>>, vector<72x256xf32>
    %54 = arith.truncf %53 : vector<72x256xf32> to vector<72x256xbf16>
    %cst = arith.constant dense<0.000000e+00> : vector<8x256xf32>
    %55 = tpu.matmul %52, %54, %cst {dimension_numbers = #tpu.dot_dimension_numbers<[1], [0], [0], [1], [0, 0, 1, 1], [], []>} : vector<8x72xbf16>, vector<72x256xbf16>, vector<8x256xf32> -> vector<8x256xf32>
    %c0_35 = arith.constant 0 : index
    %c0_36 = arith.constant 0 : index
    %c0_37 = arith.constant 0 : index
    %56 = vector.load %arg4[%c0_35, %c0_36, %c0_37] : memref<3x8x1xf32, #tpu.memory_space<vmem>>, vector<1x8x1xf32>
    %57 = vector.shape_cast %56 : vector<1x8x1xf32> to vector<8x1xf32>
    %58 = vector.broadcast %57 : vector<8x1xf32> to vector<8x256xf32>
    %59 = arith.addf %55, %58 : vector<8x256xf32>
    %cst_38 = arith.constant 0.000000e+00 : f32
    %60 = vector.broadcast %cst_38 : f32 to vector<8x256xf32>
    %61 = arith.maximumf %59, %60 : vector<8x256xf32>
    %c17_i32_39 = arith.constant 17 : i32
    %62 = tpu.dynamic_rotate %61 by %c17_i32_39 dim 1 : vector<8x256xf32>, i32 -> vector<8x256xf32>
    %c0_40 = arith.constant 0 : index
    %c0_41 = arith.constant 0 : index
    %c0_42 = arith.constant 0 : index
    %63 = vector.load %arg2[%c0_40, %c0_41, %c0_42] : memref<9x1x256xf32, #tpu.memory_space<vmem>>, vector<1x1x256xf32>
    %64 = vector.shape_cast %63 : vector<1x1x256xf32> to vector<1x256xf32>
    %65 = vector.broadcast %64 : vector<1x256xf32> to vector<8x256xf32>
    %66 = arith.mulf %62, %65 : vector<8x256xf32>
    %c0_43 = arith.constant 0 : index
    %c0_44 = arith.constant 0 : index
    %67 = vector.load %arg6[%c0_43, %c0_44] : memref<72x256xf32, #tpu.memory_space<vmem>>, vector<8x256xf32>
    tpu.vector_store %arg6[%c0_43, %c0_44], %66 {strides = array<i32>} : memref<72x256xf32, #tpu.memory_space<vmem>>, vector<8x256xf32>,
    %c16_i32_45 = arith.constant 16 : i32
    %68 = tpu.dynamic_rotate %61 by %c16_i32_45 dim 1 : vector<8x256xf32>, i32 -> vector<8x256xf32>
    %c1_46 = arith.constant 1 : index
    %c0_47 = arith.constant 0 : index
    %c0_48 = arith.constant 0 : index
    %69 = vector.load %arg2[%c1_46, %c0_47, %c0_48] : memref<9x1x256xf32, #tpu.memory_space<vmem>>, vector<1x1x256xf32>
    %70 = vector.shape_cast %69 : vector<1x1x256xf32> to vector<1x256xf32>
    %71 = vector.broadcast %70 : vector<1x256xf32> to vector<8x256xf32>
    %72 = arith.mulf %68, %71 : vector<8x256xf32>
    %c8_49 = arith.constant 8 : index
    %c0_50 = arith.constant 0 : index
    %73 = vector.load %arg6[%c8_49, %c0_50] : memref<72x256xf32, #tpu.memory_space<vmem>>, vector<8x256xf32>
    tpu.vector_store %arg6[%c8_49, %c0_50], %72 {strides = array<i32>} : memref<72x256xf32, #tpu.memory_space<vmem>>, vector<8x256xf32>,
    %c15_i32_51 = arith.constant 15 : i32
    %74 = tpu.dynamic_rotate %61 by %c15_i32_51 dim 1 : vector<8x256xf32>, i32 -> vector<8x256xf32>
    %c2_52 = arith.constant 2 : index
    %c0_53 = arith.constant 0 : index
    %c0_54 = arith.constant 0 : index
    %75 = vector.load %arg2[%c2_52, %c0_53, %c0_54] : memref<9x1x256xf32, #tpu.memory_space<vmem>>, vector<1x1x256xf32>
    %76 = vector.shape_cast %75 : vector<1x1x256xf32> to vector<1x256xf32>
    %77 = vector.broadcast %76 : vector<1x256xf32> to vector<8x256xf32>
    %78 = arith.mulf %74, %77 : vector<8x256xf32>
    %c16_55 = arith.constant 16 : index
    %c0_56 = arith.constant 0 : index
    %79 = vector.load %arg6[%c16_55, %c0_56] : memref<72x256xf32, #tpu.memory_space<vmem>>, vector<8x256xf32>
    tpu.vector_store %arg6[%c16_55, %c0_56], %78 {strides = array<i32>} : memref<72x256xf32, #tpu.memory_space<vmem>>, vector<8x256xf32>,
    %c1_i32_57 = arith.constant 1 : i32
    %80 = tpu.dynamic_rotate %61 by %c1_i32_57 dim 1 : vector<8x256xf32>, i32 -> vector<8x256xf32>
    %c3_58 = arith.constant 3 : index
    %c0_59 = arith.constant 0 : index
    %c0_60 = arith.constant 0 : index
    %81 = vector.load %arg2[%c3_58, %c0_59, %c0_60] : memref<9x1x256xf32, #tpu.memory_space<vmem>>, vector<1x1x256xf32>
    %82 = vector.shape_cast %81 : vector<1x1x256xf32> to vector<1x256xf32>
    %83 = vector.broadcast %82 : vector<1x256xf32> to vector<8x256xf32>
    %84 = arith.mulf %80, %83 : vector<8x256xf32>
    %c24_61 = arith.constant 24 : index
    %c0_62 = arith.constant 0 : index
    %85 = vector.load %arg6[%c24_61, %c0_62] : memref<72x256xf32, #tpu.memory_space<vmem>>, vector<8x256xf32>
    tpu.vector_store %arg6[%c24_61, %c0_62], %84 {strides = array<i32>} : memref<72x256xf32, #tpu.memory_space<vmem>>, vector<8x256xf32>,
    %c32_63 = arith.constant 32 : index
    %c0_64 = arith.constant 0 : index
    %86 = vector.load %arg6[%c32_63, %c0_64] : memref<72x256xf32, #tpu.memory_space<vmem>>, vector<8x256xf32>
    tpu.vector_store %arg6[%c32_63, %c0_64], %61 {strides = array<i32>} : memref<72x256xf32, #tpu.memory_space<vmem>>, vector<8x256xf32>,
    %c255_i32_65 = arith.constant 255 : i32
    %87 = tpu.dynamic_rotate %61 by %c255_i32_65 dim 1 : vector<8x256xf32>, i32 -> vector<8x256xf32>
    %c5_66 = arith.constant 5 : index
    %c0_67 = arith.constant 0 : index
    %c0_68 = arith.constant 0 : index
    %88 = vector.load %arg2[%c5_66, %c0_67, %c0_68] : memref<9x1x256xf32, #tpu.memory_space<vmem>>, vector<1x1x256xf32>
    %89 = vector.shape_cast %88 : vector<1x1x256xf32> to vector<1x256xf32>
    %90 = vector.broadcast %89 : vector<1x256xf32> to vector<8x256xf32>
    %91 = arith.mulf %87, %90 : vector<8x256xf32>
    %c40_69 = arith.constant 40 : index
    %c0_70 = arith.constant 0 : index
    %92 = vector.load %arg6[%c40_69, %c0_70] : memref<72x256xf32, #tpu.memory_space<vmem>>, vector<8x256xf32>
    tpu.vector_store %arg6[%c40_69, %c0_70], %91 {strides = array<i32>} : memref<72x256xf32, #tpu.memory_space<vmem>>, vector<8x256xf32>,
    %c241_i32_71 = arith.constant 241 : i32
    %93 = tpu.dynamic_rotate %61 by %c241_i32_71 dim 1 : vector<8x256xf32>, i32 -> vector<8x256xf32>
    %c6_72 = arith.constant 6 : index
    %c0_73 = arith.constant 0 : index
    %c0_74 = arith.constant 0 : index
    %94 = vector.load %arg2[%c6_72, %c0_73, %c0_74] : memref<9x1x256xf32, #tpu.memory_space<vmem>>, vector<1x1x256xf32>
    %95 = vector.shape_cast %94 : vector<1x1x256xf32> to vector<1x256xf32>
    %96 = vector.broadcast %95 : vector<1x256xf32> to vector<8x256xf32>
    %97 = arith.mulf %93, %96 : vector<8x256xf32>
    %c48_75 = arith.constant 48 : index
    %c0_76 = arith.constant 0 : index
    %98 = vector.load %arg6[%c48_75, %c0_76] : memref<72x256xf32, #tpu.memory_space<vmem>>, vector<8x256xf32>
    tpu.vector_store %arg6[%c48_75, %c0_76], %97 {strides = array<i32>} : memref<72x256xf32, #tpu.memory_space<vmem>>, vector<8x256xf32>,
    %c240_i32_77 = arith.constant 240 : i32
    %99 = tpu.dynamic_rotate %61 by %c240_i32_77 dim 1 : vector<8x256xf32>, i32 -> vector<8x256xf32>
    %c7_78 = arith.constant 7 : index
    %c0_79 = arith.constant 0 : index
    %c0_80 = arith.constant 0 : index
    %100 = vector.load %arg2[%c7_78, %c0_79, %c0_80] : memref<9x1x256xf32, #tpu.memory_space<vmem>>, vector<1x1x256xf32>
    %101 = vector.shape_cast %100 : vector<1x1x256xf32> to vector<1x256xf32>
    %102 = vector.broadcast %101 : vector<1x256xf32> to vector<8x256xf32>
    %103 = arith.mulf %99, %102 : vector<8x256xf32>
    %c56_81 = arith.constant 56 : index
    %c0_82 = arith.constant 0 : index
    %104 = vector.load %arg6[%c56_81, %c0_82] : memref<72x256xf32, #tpu.memory_space<vmem>>, vector<8x256xf32>
    tpu.vector_store %arg6[%c56_81, %c0_82], %103 {strides = array<i32>} : memref<72x256xf32, #tpu.memory_space<vmem>>, vector<8x256xf32>,
    %c239_i32_83 = arith.constant 239 : i32
    %105 = tpu.dynamic_rotate %61 by %c239_i32_83 dim 1 : vector<8x256xf32>, i32 -> vector<8x256xf32>
    %c8_84 = arith.constant 8 : index
    %c0_85 = arith.constant 0 : index
    %c0_86 = arith.constant 0 : index
    %106 = vector.load %arg2[%c8_84, %c0_85, %c0_86] : memref<9x1x256xf32, #tpu.memory_space<vmem>>, vector<1x1x256xf32>
    %107 = vector.shape_cast %106 : vector<1x1x256xf32> to vector<1x256xf32>
    %108 = vector.broadcast %107 : vector<1x256xf32> to vector<8x256xf32>
    %109 = arith.mulf %105, %108 : vector<8x256xf32>
    %c64_87 = arith.constant 64 : index
    %c0_88 = arith.constant 0 : index
    %110 = vector.load %arg6[%c64_87, %c0_88] : memref<72x256xf32, #tpu.memory_space<vmem>>, vector<8x256xf32>
    tpu.vector_store %arg6[%c64_87, %c0_88], %109 {strides = array<i32>} : memref<72x256xf32, #tpu.memory_space<vmem>>, vector<8x256xf32>,
    %c1_89 = arith.constant 1 : index
    %c0_90 = arith.constant 0 : index
    %c0_91 = arith.constant 0 : index
    %111 = vector.load %arg3[%c1_89, %c0_90, %c0_91] : memref<3x8x72xbf16, #tpu.memory_space<vmem>>, vector<1x8x72xbf16>
    %112 = vector.shape_cast %111 : vector<1x8x72xbf16> to vector<8x72xbf16>
    %c0_92 = arith.constant 0 : index
    %c0_93 = arith.constant 0 : index
    %113 = vector.load %arg6[%c0_92, %c0_93] : memref<72x256xf32, #tpu.memory_space<vmem>>, vector<72x256xf32>
    %114 = arith.truncf %113 : vector<72x256xf32> to vector<72x256xbf16>
    %cst_94 = arith.constant dense<0.000000e+00> : vector<8x256xf32>
    %115 = tpu.matmul %112, %114, %cst_94 {dimension_numbers = #tpu.dot_dimension_numbers<[1], [0], [0], [1], [0, 0, 1, 1], [], []>} : vector<8x72xbf16>, vector<72x256xbf16>, vector<8x256xf32> -> vector<8x256xf32>
    %c1_95 = arith.constant 1 : index
    %c0_96 = arith.constant 0 : index
    %c0_97 = arith.constant 0 : index
    %116 = vector.load %arg4[%c1_95, %c0_96, %c0_97] : memref<3x8x1xf32, #tpu.memory_space<vmem>>, vector<1x8x1xf32>
    %117 = vector.shape_cast %116 : vector<1x8x1xf32> to vector<8x1xf32>
    %118 = vector.broadcast %117 : vector<8x1xf32> to vector<8x256xf32>
    %119 = arith.addf %115, %118 : vector<8x256xf32>
    %cst_98 = arith.constant 0.000000e+00 : f32
    %120 = vector.broadcast %cst_98 : f32 to vector<8x256xf32>
    %121 = arith.maximumf %119, %120 : vector<8x256xf32>
    %c17_i32_99 = arith.constant 17 : i32
    %122 = tpu.dynamic_rotate %121 by %c17_i32_99 dim 1 : vector<8x256xf32>, i32 -> vector<8x256xf32>
    %c0_100 = arith.constant 0 : index
    %c0_101 = arith.constant 0 : index
    %c0_102 = arith.constant 0 : index
    %123 = vector.load %arg2[%c0_100, %c0_101, %c0_102] : memref<9x1x256xf32, #tpu.memory_space<vmem>>, vector<1x1x256xf32>
    %124 = vector.shape_cast %123 : vector<1x1x256xf32> to vector<1x256xf32>
    %125 = vector.broadcast %124 : vector<1x256xf32> to vector<8x256xf32>
    %126 = arith.mulf %122, %125 : vector<8x256xf32>
    %c0_103 = arith.constant 0 : index
    %c0_104 = arith.constant 0 : index
    %127 = vector.load %arg6[%c0_103, %c0_104] : memref<72x256xf32, #tpu.memory_space<vmem>>, vector<8x256xf32>
    tpu.vector_store %arg6[%c0_103, %c0_104], %126 {strides = array<i32>} : memref<72x256xf32, #tpu.memory_space<vmem>>, vector<8x256xf32>,
    %c16_i32_105 = arith.constant 16 : i32
    %128 = tpu.dynamic_rotate %121 by %c16_i32_105 dim 1 : vector<8x256xf32>, i32 -> vector<8x256xf32>
    %c1_106 = arith.constant 1 : index
    %c0_107 = arith.constant 0 : index
    %c0_108 = arith.constant 0 : index
    %129 = vector.load %arg2[%c1_106, %c0_107, %c0_108] : memref<9x1x256xf32, #tpu.memory_space<vmem>>, vector<1x1x256xf32>
    %130 = vector.shape_cast %129 : vector<1x1x256xf32> to vector<1x256xf32>
    %131 = vector.broadcast %130 : vector<1x256xf32> to vector<8x256xf32>
    %132 = arith.mulf %128, %131 : vector<8x256xf32>
    %c8_109 = arith.constant 8 : index
    %c0_110 = arith.constant 0 : index
    %133 = vector.load %arg6[%c8_109, %c0_110] : memref<72x256xf32, #tpu.memory_space<vmem>>, vector<8x256xf32>
    tpu.vector_store %arg6[%c8_109, %c0_110], %132 {strides = array<i32>} : memref<72x256xf32, #tpu.memory_space<vmem>>, vector<8x256xf32>,
    %c15_i32_111 = arith.constant 15 : i32
    %134 = tpu.dynamic_rotate %121 by %c15_i32_111 dim 1 : vector<8x256xf32>, i32 -> vector<8x256xf32>
    %c2_112 = arith.constant 2 : index
    %c0_113 = arith.constant 0 : index
    %c0_114 = arith.constant 0 : index
    %135 = vector.load %arg2[%c2_112, %c0_113, %c0_114] : memref<9x1x256xf32, #tpu.memory_space<vmem>>, vector<1x1x256xf32>
    %136 = vector.shape_cast %135 : vector<1x1x256xf32> to vector<1x256xf32>
    %137 = vector.broadcast %136 : vector<1x256xf32> to vector<8x256xf32>
    %138 = arith.mulf %134, %137 : vector<8x256xf32>
    %c16_115 = arith.constant 16 : index
    %c0_116 = arith.constant 0 : index
    %139 = vector.load %arg6[%c16_115, %c0_116] : memref<72x256xf32, #tpu.memory_space<vmem>>, vector<8x256xf32>
    tpu.vector_store %arg6[%c16_115, %c0_116], %138 {strides = array<i32>} : memref<72x256xf32, #tpu.memory_space<vmem>>, vector<8x256xf32>,
    %c1_i32_117 = arith.constant 1 : i32
    %140 = tpu.dynamic_rotate %121 by %c1_i32_117 dim 1 : vector<8x256xf32>, i32 -> vector<8x256xf32>
    %c3_118 = arith.constant 3 : index
    %c0_119 = arith.constant 0 : index
    %c0_120 = arith.constant 0 : index
    %141 = vector.load %arg2[%c3_118, %c0_119, %c0_120] : memref<9x1x256xf32, #tpu.memory_space<vmem>>, vector<1x1x256xf32>
    %142 = vector.shape_cast %141 : vector<1x1x256xf32> to vector<1x256xf32>
    %143 = vector.broadcast %142 : vector<1x256xf32> to vector<8x256xf32>
    %144 = arith.mulf %140, %143 : vector<8x256xf32>
    %c24_121 = arith.constant 24 : index
    %c0_122 = arith.constant 0 : index
    %145 = vector.load %arg6[%c24_121, %c0_122] : memref<72x256xf32, #tpu.memory_space<vmem>>, vector<8x256xf32>
    tpu.vector_store %arg6[%c24_121, %c0_122], %144 {strides = array<i32>} : memref<72x256xf32, #tpu.memory_space<vmem>>, vector<8x256xf32>,
    %c32_123 = arith.constant 32 : index
    %c0_124 = arith.constant 0 : index
    %146 = vector.load %arg6[%c32_123, %c0_124] : memref<72x256xf32, #tpu.memory_space<vmem>>, vector<8x256xf32>
    tpu.vector_store %arg6[%c32_123, %c0_124], %121 {strides = array<i32>} : memref<72x256xf32, #tpu.memory_space<vmem>>, vector<8x256xf32>,
    %c255_i32_125 = arith.constant 255 : i32
    %147 = tpu.dynamic_rotate %121 by %c255_i32_125 dim 1 : vector<8x256xf32>, i32 -> vector<8x256xf32>
    %c5_126 = arith.constant 5 : index
    %c0_127 = arith.constant 0 : index
    %c0_128 = arith.constant 0 : index
    %148 = vector.load %arg2[%c5_126, %c0_127, %c0_128] : memref<9x1x256xf32, #tpu.memory_space<vmem>>, vector<1x1x256xf32>
    %149 = vector.shape_cast %148 : vector<1x1x256xf32> to vector<1x256xf32>
    %150 = vector.broadcast %149 : vector<1x256xf32> to vector<8x256xf32>
    %151 = arith.mulf %147, %150 : vector<8x256xf32>
    %c40_129 = arith.constant 40 : index
    %c0_130 = arith.constant 0 : index
    %152 = vector.load %arg6[%c40_129, %c0_130] : memref<72x256xf32, #tpu.memory_space<vmem>>, vector<8x256xf32>
    tpu.vector_store %arg6[%c40_129, %c0_130], %151 {strides = array<i32>} : memref<72x256xf32, #tpu.memory_space<vmem>>, vector<8x256xf32>,
    %c241_i32_131 = arith.constant 241 : i32
    %153 = tpu.dynamic_rotate %121 by %c241_i32_131 dim 1 : vector<8x256xf32>, i32 -> vector<8x256xf32>
    %c6_132 = arith.constant 6 : index
    %c0_133 = arith.constant 0 : index
    %c0_134 = arith.constant 0 : index
    %154 = vector.load %arg2[%c6_132, %c0_133, %c0_134] : memref<9x1x256xf32, #tpu.memory_space<vmem>>, vector<1x1x256xf32>
    %155 = vector.shape_cast %154 : vector<1x1x256xf32> to vector<1x256xf32>
    %156 = vector.broadcast %155 : vector<1x256xf32> to vector<8x256xf32>
    %157 = arith.mulf %153, %156 : vector<8x256xf32>
    %c48_135 = arith.constant 48 : index
    %c0_136 = arith.constant 0 : index
    %158 = vector.load %arg6[%c48_135, %c0_136] : memref<72x256xf32, #tpu.memory_space<vmem>>, vector<8x256xf32>
    tpu.vector_store %arg6[%c48_135, %c0_136], %157 {strides = array<i32>} : memref<72x256xf32, #tpu.memory_space<vmem>>, vector<8x256xf32>,
    %c240_i32_137 = arith.constant 240 : i32
    %159 = tpu.dynamic_rotate %121 by %c240_i32_137 dim 1 : vector<8x256xf32>, i32 -> vector<8x256xf32>
    %c7_138 = arith.constant 7 : index
    %c0_139 = arith.constant 0 : index
    %c0_140 = arith.constant 0 : index
    %160 = vector.load %arg2[%c7_138, %c0_139, %c0_140] : memref<9x1x256xf32, #tpu.memory_space<vmem>>, vector<1x1x256xf32>
    %161 = vector.shape_cast %160 : vector<1x1x256xf32> to vector<1x256xf32>
    %162 = vector.broadcast %161 : vector<1x256xf32> to vector<8x256xf32>
    %163 = arith.mulf %159, %162 : vector<8x256xf32>
    %c56_141 = arith.constant 56 : index
    %c0_142 = arith.constant 0 : index
    %164 = vector.load %arg6[%c56_141, %c0_142] : memref<72x256xf32, #tpu.memory_space<vmem>>, vector<8x256xf32>
    tpu.vector_store %arg6[%c56_141, %c0_142], %163 {strides = array<i32>} : memref<72x256xf32, #tpu.memory_space<vmem>>, vector<8x256xf32>,
    %c239_i32_143 = arith.constant 239 : i32
    %165 = tpu.dynamic_rotate %121 by %c239_i32_143 dim 1 : vector<8x256xf32>, i32 -> vector<8x256xf32>
    %c8_144 = arith.constant 8 : index
    %c0_145 = arith.constant 0 : index
    %c0_146 = arith.constant 0 : index
    %166 = vector.load %arg2[%c8_144, %c0_145, %c0_146] : memref<9x1x256xf32, #tpu.memory_space<vmem>>, vector<1x1x256xf32>
    %167 = vector.shape_cast %166 : vector<1x1x256xf32> to vector<1x256xf32>
    %168 = vector.broadcast %167 : vector<1x256xf32> to vector<8x256xf32>
    %169 = arith.mulf %165, %168 : vector<8x256xf32>
    %c64_147 = arith.constant 64 : index
    %c0_148 = arith.constant 0 : index
    %170 = vector.load %arg6[%c64_147, %c0_148] : memref<72x256xf32, #tpu.memory_space<vmem>>, vector<8x256xf32>
    tpu.vector_store %arg6[%c64_147, %c0_148], %169 {strides = array<i32>} : memref<72x256xf32, #tpu.memory_space<vmem>>, vector<8x256xf32>,
    %c2_149 = arith.constant 2 : index
    %c0_150 = arith.constant 0 : index
    %c0_151 = arith.constant 0 : index
    %171 = vector.load %arg3[%c2_149, %c0_150, %c0_151] : memref<3x8x72xbf16, #tpu.memory_space<vmem>>, vector<1x8x72xbf16>
    %172 = vector.shape_cast %171 : vector<1x8x72xbf16> to vector<8x72xbf16>
    %c0_152 = arith.constant 0 : index
    %c0_153 = arith.constant 0 : index
    %173 = vector.load %arg6[%c0_152, %c0_153] : memref<72x256xf32, #tpu.memory_space<vmem>>, vector<72x256xf32>
    %174 = arith.truncf %173 : vector<72x256xf32> to vector<72x256xbf16>
    %cst_154 = arith.constant dense<0.000000e+00> : vector<8x256xf32>
    %175 = tpu.matmul %172, %174, %cst_154 {dimension_numbers = #tpu.dot_dimension_numbers<[1], [0], [0], [1], [0, 0, 1, 1], [], []>} : vector<8x72xbf16>, vector<72x256xbf16>, vector<8x256xf32> -> vector<8x256xf32>
    %c2_155 = arith.constant 2 : index
    %c0_156 = arith.constant 0 : index
    %c0_157 = arith.constant 0 : index
    %176 = vector.load %arg4[%c2_155, %c0_156, %c0_157] : memref<3x8x1xf32, #tpu.memory_space<vmem>>, vector<1x8x1xf32>
    %177 = vector.shape_cast %176 : vector<1x8x1xf32> to vector<8x1xf32>
    %178 = vector.broadcast %177 : vector<8x1xf32> to vector<8x256xf32>
    %179 = arith.addf %175, %178 : vector<8x256xf32>
    %c0_158 = arith.constant 0 : index
    %c0_159 = arith.constant 0 : index
    %c0_160 = arith.constant 0 : index
    %180 = vector.load %arg1[%c0_158, %c0_159, %c0_160] : memref<1x8x256xf32, #tpu.memory_space<vmem>>, vector<1x8x256xf32>
    %181 = vector.shape_cast %180 : vector<1x8x256xf32> to vector<8x256xf32>
    %182 = arith.addf %179, %181 : vector<8x256xf32>
    %cst_161 = arith.constant 0.000000e+00 : f32
    %183 = vector.broadcast %cst_161 : f32 to vector<8x256xf32>
    %184 = arith.maximumf %182, %183 : vector<8x256xf32>
    %c0_162 = arith.constant 0 : index
    %c0_163 = arith.constant 0 : index
    %c0_164 = arith.constant 0 : index
    %185 = vector.load %arg5[%c0_162, %c0_163, %c0_164] : memref<1x8x256xf32, #tpu.memory_space<vmem>>, vector<1x8x256xf32>
    %186 = vector.shape_cast %185 : vector<1x8x256xf32> to vector<8x256xf32>
    %187 = vector.shape_cast %184 : vector<8x256xf32> to vector<1x8x256xf32>
    tpu.vector_store %arg5[%c0_162, %c0_163, %c0_164], %187 {strides = array<i32>} : memref<1x8x256xf32, #tpu.memory_space<vmem>>, vector<1x8x256xf32>,
    return
  }
  func.func @transform_0(%arg0: i32) -> (i32, i32, i32) {
    %c0_i32 = arith.constant 0 : i32
    %c0_i32_0 = arith.constant 0 : i32
    %c0_i32_1 = arith.constant 0 : i32
    return %arg0, %c0_i32, %c0_i32_0 : i32, i32, i32
  }
  func.func @transform_1(%arg0: i32) -> (i32, i32, i32) {
    %c0_i32 = arith.constant 0 : i32
    %c0_i32_0 = arith.constant 0 : i32
    %c0_i32_1 = arith.constant 0 : i32
    %c0_i32_2 = arith.constant 0 : i32
    return %c0_i32, %c0_i32_0, %c0_i32_1 : i32, i32, i32
  }
  func.func @transform_2(%arg0: i32) -> (i32, i32, i32) {
    %c0_i32 = arith.constant 0 : i32
    %c0_i32_0 = arith.constant 0 : i32
    %c0_i32_1 = arith.constant 0 : i32
    %c0_i32_2 = arith.constant 0 : i32
    return %c0_i32, %c0_i32_0, %c0_i32_1 : i32, i32, i32
  }
  func.func @transform_3(%arg0: i32) -> (i32, i32, i32) {
    %c0_i32 = arith.constant 0 : i32
    %c0_i32_0 = arith.constant 0 : i32
    %c0_i32_1 = arith.constant 0 : i32
    %c0_i32_2 = arith.constant 0 : i32
    return %c0_i32, %c0_i32_0, %c0_i32_1 : i32, i32, i32
  }
  func.func @transform_4(%arg0: i32) -> (i32, i32, i32) {
    %c0_i32 = arith.constant 0 : i32
    %c0_i32_0 = arith.constant 0 : i32
    %c0_i32_1 = arith.constant 0 : i32
    return %arg0, %c0_i32, %c0_i32_0 : i32, i32, i32
  }
}

</mosaic_0001>

<bundles_post_ra>
// kernel: tpu_custom_call.1
= control target key start
LH: loop header
LB: loop body
LE: loop exit
PB: predicated region body
PF: predicated region fallthrough
CT: control target
= control target key end

     0   :  { %9 = vsyncpa [#allocation4], 0  ;;  %s1190_s0 = inlined_call_operand.hbm [shape: f32[1,8,256], index: 0, kind: input, shape index: {}]   ;;  %s1191_s1 = inlined_call_operand.vmem [shape: f32[9,1,256], index: 1, kind: input, shape index: {}]   ;;  %s1192_s2 = inlined_call_operand.hbm [shape: bf16[3,8,72], index: 2, kind: input, shape index: {}]   ;;  %s1193_s3 = inlined_call_operand.vmem [shape: f32[3,8,1], index: 3, kind: input, shape index: {}]   ;;  %s1194_s4 = inlined_call_operand.hbm [shape: f32[1,8,256], index: 4, kind: output, shape index: {}]  }
   0x1   :  { %10 = vsyncpa [#allocation7], 0 }
   0x2   :  { %11 = vsyncpa [#allocation5], 0  ;;  %s17_s17 = sshll.u32 %s1190_s0, 4  ;;  %s827_s18 = smov [#allocation3]   ;;  %s18_s17 = int_to_ptr.hbm [resolvable:$true] %s17_s17 }
   0x3   :  { %s19_s19 = sshll.u32 %s827_s18, 4  ;;  %s29_s22 = sshll.u32 %s1192_s2, 4  ;;  %s20_s19 = int_to_ptr.vmem [resolvable:$true] %s19_s19  ;;  %s30_s22 = int_to_ptr.hbm [resolvable:$true] %s29_s22 }
   0x4   :  { %22 = dma.hbm_to_vmem [thread:$0]  %s18_s17, 256, %s20_s19, [#allocation4]  }
   0x5   :  { %s828_s23 = smov [#allocation6]   ;;  %s829_s25 = smov 64  }
   0x6   :  { %s31_s24 = sshll.u32 %s828_s23, 4  ;;  %s830_s26 = smov 4   ;;  %s32_s24 = int_to_ptr.vmem [resolvable:$true] %s31_s24 }
   0x7   :  { %37 = dma.hbm_to_vmem [thread:$0]  %s30_s22, 192, %s32_s24, [#allocation7], %s829_s25, %s829_s25, %s830_s26  }
   0x8   :  { %821 = dma.done.wait [#allocation4], 256  }
   0x9   :  { %822 = vsyncadd [#allocation4], 4294967040 }
   0xa   :  { %823 = dma.done.wait [#allocation7], 192  }
   0xb   :  { %824 = vsyncadd [#allocation7], 4294967104  ;;  %v872_v0 = vld [vmem:[#allocation3] sm:$0xff]  ;;  %s831_s0 = smov 113   ;;  %s832_s27 = smov 111   ;;  %v880_v1 = vld [vmem:[#allocation3 + $0x8] sm:$0xff]  ;;  %v55_v3 = vlaneseq }
   0xc   :  { %144 = vrot.lane.b32.xlu1 %v872_v0, %s831_s0  ;;  %180 = vrot.lane.b32.xlu0 %v872_v0, %s832_s27  ;;  %s833_s2 = smov 112   ;;  %s834_s28 = smov 127   ;;  %v710_v8 = vld [vmem:[%s1191_s1 + $0x10] sm:$0x3]  ;;  %v709_v9 = vld [vmem:[%s1191_s1 + $0xe] sm:$0x3] }
   0xd   :  { %162 = vrot.lane.b32.xlu2 %v872_v0, %s833_s2  ;;  %s835_s29 = smov 15   ;;  %s836_s30 = smov 1   ;;  %v908_v6 = vand.u32 127, %v55_v3  ;;  %v708_v10 = vld [vmem:[%s1191_s1 + $0xc] sm:$0x3]  ;;  %v190_v11 = vperm.slane %v710_v8, 0 }
   0xe   :  { %s837_s5 = smov 17   ;;  %s838_s6 = smov 16   ;;  %v191_v12 = vperm.slane %v710_v8, 1  ;;  %v172_v13 = vperm.slane %v709_v9, 0  ;;  %v173_v14 = vperm.slane %v709_v9, 1  ;;  %v154_v15 = vperm.slane %v708_v10, 0 }
   0xf   :  { %vm166_vm0 = vcmp.lt.s32.totalorder %v908_v6, 112  ;;  %vm148_vm1 = vcmp.lt.s32.totalorder %v908_v6, 113  ;;  %vm184_vm2 = vcmp.lt.s32.totalorder %v908_v6, 111  ;;  %v155_v16 = vperm.slane %v708_v10, 1  ;;  %v707_v27 = vld [vmem:[%s1191_s1 + $0xa] sm:$0x3] }
  0x10   :  { %vm237_vm3 = vcmask 1043456   ;;  %vm130_vm4 = vcmp.lt.s32.totalorder %v908_v6, 127  ;;  %v136_v37 = vperm.slane %v707_v27, 0  ;;  %v137_v38 = vperm.slane %v707_v27, 1  ;;  %v227_v45 = vld [vmem:[%s1193_s3] sm:$0xff]  ;;  %s693_s15 = sshll.u32 %s1194_s4, 4  ;;  %s694_s15 = int_to_ptr.hbm [resolvable:$true] %s693_s15 }
  0x11   :  { %v706_v48 = vld [vmem:[%s1191_s1 + $0x6] sm:$0x3]  ;;  %v839_v49 = vmov 0   ;;  %v705_v50 = vld [vmem:[%s1191_s1 + $0x4] sm:$0x3]  ;;  %vm110_vm5 = vcmp.lt.s32.totalorder %v908_v6, 1 }
  0x12   :  { %747 = vset.pattern.permute.xlu1 %v839_v49  ;;  %748 = vset.pattern.permute.xlu0 %v839_v49  ;;  %v116_v53 = vperm.slane %v706_v48, 0  ;;  %v117_v55 = vperm.slane %v706_v48, 1  ;;  %vm92_vm6 = vcmp.lt.s32.totalorder %v908_v6, 15  ;;  %v98_v56 = vperm.slane %v705_v50, 0  ;;  %v60_v10 = vld [vmem:[%s1191_s1] sm:$0x3] }
  0x13   :  { %v99_v57 = vperm.slane %v705_v50, 1  ;;  %vm57_vm7 = vcmp.lt.s32.totalorder %v908_v6, 17  ;;  %vm74_vm8 = vcmp.lt.s32.totalorder %v908_v6, 16  ;;  %vm233_vm9 = vcmask 588800   ;;  %v717_v49 = vld [vmem:[%s1191_s1 + $0xc] sm:$0x3] }
  0x14   :  { %146 = vrot.lane.b32.xlu1 %v880_v1, %s831_s0  ;;  %182 = vrot.lane.b32.xlu0 %v880_v1, %s832_s27 }
  0x15   :  { %164 = vrot.lane.b32.xlu2 %v880_v1, %s833_s2 }
  0x1c   :  { %128 = vrot.lane.b32.xlu1 %v880_v1, %s834_s28  ;;  %126 = vrot.lane.b32.xlu0 %v872_v0, %s834_s28 }
  0x1d   :  { %88 = vrot.lane.b32.xlu2 %v872_v0, %s835_s29 }
  0x24   :  { %106 = vrot.lane.b32.xlu1 %v872_v0, %s836_s30  ;;  %90 = vrot.lane.b32.xlu0 %v880_v1, %s835_s29 }
  0x25   :  { %108 = vrot.lane.b32.xlu2 %v880_v1, %s836_s30 }
  0x2c   :  { %53 = vrot.lane.b32.xlu1 %v880_v1, %s837_s5  ;;  %51 = vrot.lane.b32.xlu0 %v872_v0, %s837_s5 }
  0x2d   :  { %70 = vrot.lane.b32.xlu2 %v872_v0, %s838_s6 }
  0x34   :  { %72 = vrot.lane.b32.xlu0 %v880_v1, %s838_s6  ;;  %230 = vperm.xlu1 %747, %v227_v45  }
  0x67   :  { %v163_v2 = vpop.permute.xlu2 %162 }
  0x6f   :  { %v165_v7 = vpop.permute.xlu2 %164 }
  0x70   :  { %v167_v19 = vsel %vm166_vm0, %v163_v2, %v165_v7  ;;  %v168_v23 = vsel %vm166_vm0, %v165_v7, %v163_v2 }
  0x71   :  { %v176_v28 = vmul.f32 %v172_v13, %v167_v19  ;;  %v177_v33 = vmul.f32 %v173_v14, %v168_v23  ;;  %v62_v13 = vperm.slane %v60_v10, 0  ;;  %v63_v14 = vperm.slane %v60_v10, 1 }
  0x77   :  { %v89_v32 = vpop.permute.xlu2 %88 }
  0x7e   :  { %v145_v4 = vpop.permute.xlu1 %144  ;;  %v181_v5 = vpop.permute.xlu0 %180 }
  0x7f   :  { %v109_v54 = vpop.permute.xlu2 %108 }
  0x86   :  { %v147_v17 = vpop.permute.xlu1 %146  ;;  %v183_v18 = vpop.permute.xlu0 %182 }
  0x87   :  { %v149_v20 = vsel %vm148_vm1, %v145_v4, %v147_v17  ;;  %v185_v21 = vsel %vm184_vm2, %v181_v5, %v183_v18  ;;  %v186_v22 = vsel %vm184_vm2, %v183_v18, %v181_v5  ;;  %v150_v24 = vsel %vm148_vm1, %v147_v17, %v145_v4 }
  0x88   :  { %v194_v25 = vmul.f32 %v190_v11, %v185_v21  ;;  %v195_v26 = vmul.f32 %v191_v12, %v186_v22  ;;  %v158_v29 = vmul.f32 %v154_v15, %v149_v20  ;;  %v159_v34 = vmul.f32 %v155_v16, %v150_v24  ;;  %v704_v11 = vld [vmem:[%s1191_s1 + $0x2] sm:$0x3]  ;;  %v71_v15 = vpop.permute.xlu2 %70 }
  0x89   :  { %v80_v16 = vperm.slane %v704_v11, 0  ;;  %v81_v17 = vperm.slane %v704_v11, 1 }
  0x8a   :  { %v225_v30 = vpack.c.bf16 %v194_v25, %v194_v25  ;;  %v226_v31 = vpack.c.bf16 %v195_v26, %v195_v26  ;;  %v223_v41 = vpack.c.bf16 %v176_v28, %v158_v29  ;;  %v224_v44 = vpack.c.bf16 %v177_v33, %v159_v34  ;;  %v198_v29 = vld [vmem:[#allocation6] sm:$0xf] }
  0x8c   :  { %v239_v35 = vsel %vm237_vm3, %v225_v30, 0  ;;  %v242_v36 = vsel %vm237_vm3, %v226_v31, 0 }
  0x8d   :  { %247 = vmatpush.bf16.msra.mxu0 %v239_v35  ;;  %260 = vmatpush.bf16.msra.mxu1 %v242_v36 }
  0x8e   :  { %v129_v39 = vpop.permute.xlu1 %128  ;;  %v127_v40 = vpop.permute.xlu0 %126 }
  0x8f   :  { %v131_v42 = vsel %vm130_vm4, %v127_v40, %v129_v39  ;;  %v132_v43 = vsel %vm130_vm4, %v129_v39, %v127_v40 }
  0x90   :  { %v140_v46 = vmul.f32 %v136_v37, %v131_v42  ;;  %v141_v47 = vmul.f32 %v137_v38, %v132_v43 }
  0x91   :  { %248 = vmatpush.bf16.msra.mxu0 %v223_v41  ;;  %261 = vmatpush.bf16.msra.mxu1 %v224_v44  ;;  %v719_v41 = vld [vmem:[%s1191_s1 + $0x10] sm:$0x3] }
  0x92   :  { %v221_v51 = vpack.c.bf16 %v140_v46, %v872_v0  ;;  %v222_v52 = vpack.c.bf16 %v141_v47, %v880_v1  ;;  %v394_v42 = vperm.slane %v719_v41, 0  ;;  %v395_v43 = vperm.slane %v719_v41, 1 }
  0x95   :  { %249 = vmatpush.bf16.msra.mxu0 %v221_v51  ;;  %262 = vmatpush.bf16.msra.mxu1 %v222_v52  ;;  %v718_v52 = vld [vmem:[%s1191_s1 + $0xe] sm:$0x3] }
  0x96   :  { %v107_v58 = vpop.permute.xlu1 %106  ;;  %v91_v59 = vpop.permute.xlu0 %90 }
  0x97   :  { %v111_v60 = vsel %vm110_vm5, %v107_v58, %v109_v54  ;;  %v112_v61 = vsel %vm110_vm5, %v109_v54, %v107_v58  ;;  %v93_v62 = vsel %vm92_vm6, %v89_v32, %v91_v59  ;;  %v94_v63 = vsel %vm92_vm6, %v91_v59, %v89_v32 }
  0x98   :  { %v120_v2 = vmul.f32 %v116_v53, %v112_v61  ;;  %v121_v3 = vmul.f32 %v117_v55, %v111_v60  ;;  %v102_v4 = vmul.f32 %v98_v56, %v94_v63  ;;  %v103_v5 = vmul.f32 %v99_v57, %v93_v62 }
  0x99   :  { %v362_v55 = vperm.slane %v717_v49, 0  ;;  %v363_v56 = vperm.slane %v717_v49, 1  ;;  %v378_v59 = vperm.slane %v718_v52, 0  ;;  %v379_v60 = vperm.slane %v718_v52, 1 }
  0x9a   :  { %v219_v7 = vpack.c.bf16 %v120_v2, %v102_v4  ;;  %v220_v8 = vpack.c.bf16 %v121_v3, %v103_v5  ;;  %v720_v5 = vld [vmem:[%s1193_s3 + $0x8] sm:$0xff] }
  0x9c   :  { %250 = vmatpush.bf16.msra.mxu0 %v219_v7  ;;  %263 = vmatpush.bf16.msra.mxu1 %v220_v8 }
  0x9e   :  { %v52_v9 = vpop.permute.xlu0 %51  ;;  %v54_v12 = vpop.permute.xlu1 %53 }
  0x9f   :  { %v58_v18 = vsel %vm57_vm7, %v52_v9, %v54_v12  ;;  %v59_v19 = vsel %vm57_vm7, %v54_v12, %v52_v9  ;;  %v716_v12 = vld [vmem:[%s1191_s1 + $0xa] sm:$0x3] }
  0xa0   :  { %v66_v23 = vmul.f32 %v62_v13, %v59_v19  ;;  %v67_v24 = vmul.f32 %v63_v14, %v58_v18 }
  0xa6   :  { %v73_v20 = vpop.permute.xlu0 %72  ;;  %v231_v30 = vpop.permute.xlu1 %230 }
  0xa7   :  { %v75_v21 = vsel %vm74_vm8, %v71_v15, %v73_v20  ;;  %v76_v22 = vsel %vm74_vm8, %v73_v20, %v71_v15  ;;  %v346_v15 = vperm.slane %v716_v12, 0 }
  0xa8   :  { %v84_v25 = vmul.f32 %v80_v16, %v76_v22  ;;  %v85_v26 = vmul.f32 %v81_v17, %v75_v21  ;;  %v347_v16 = vperm.slane %v716_v12, 1  ;;  %v730_v12 = vld [vmem:[%s1193_s3 + $0x10] sm:$0xff] }
  0xaa   :  { %v217_v27 = vpack.c.bf16 %v84_v25, %v66_v23  ;;  %v218_v28 = vpack.c.bf16 %v85_v26, %v67_v24  ;;  %v714_v23 = vld [vmem:[%s1191_s1 + $0x4] sm:$0x3]  ;;  %v715_v24 = vld [vmem:[%s1191_s1 + $0x6] sm:$0x3] }
  0xac   :  { %251 = vmatpush.bf16.msra.mxu0 %v217_v27  ;;  %264 = vmatpush.bf16.msra.mxu1 %v218_v28  ;;  %v312_v28 = vperm.slane %v714_v23, 0 }
  0xaf   :  { %711 = vmatmul.msk.bf16.vlgmr.msra.gmra.mxu0 %vm233_vm9, %v198_v29  ;;  %712 = vmatmul.msk.bf16.vlgmr.msra.gmra.mxu1 %vm233_vm9, %v198_v29  ;;  %v313_v29 = vperm.slane %v714_v23, 1 }
 0x12c   :  { %v253_v31 = vpop.f32.mrf.mxu0  ;;  %v266_v32 = vpop.f32.mrf.mxu1 }
 0x12d   :  { %v254_v33 = vadd.f32 %v253_v31, %v231_v30  ;;  %v267_v34 = vadd.f32 %v266_v32, %v231_v30  ;;  %v328_v30 = vperm.slane %v715_v24, 0  ;;  %v329_v31 = vperm.slane %v715_v24, 1 }
 0x12f   :  { %v983_v35 = vmax.f32 %v254_v33, 0.0  ;;  %v985_v36 = vmax.f32 %v267_v34, 0.0 }
 0x131   :  { %354 = vrot.lane.b32.xlu1 %v983_v35, %s831_s0  ;;  %386 = vrot.lane.b32.xlu2 %v983_v35, %s832_s27 }
 0x132   :  { %388 = vrot.lane.b32.xlu0 %v985_v36, %s832_s27 }
 0x134   :  { %v255_v37 = vpop.f32.mrf.mxu0  ;;  %v268_v38 = vpop.f32.mrf.mxu1 }
 0x139   :  { %372 = vrot.lane.b32.xlu1 %v985_v36, %s833_s2  ;;  %356 = vrot.lane.b32.xlu2 %v985_v36, %s831_s0 }
 0x13a   :  { %370 = vrot.lane.b32.xlu0 %v983_v35, %s833_s2 }
 0x141   :  { %304 = vrot.lane.b32.xlu1 %v983_v35, %s835_s29  ;;  %338 = vrot.lane.b32.xlu2 %v983_v35, %s834_s28 }
 0x142   :  { %340 = vrot.lane.b32.xlu0 %v985_v36, %s834_s28 }
 0x149   :  { %322 = vrot.lane.b32.xlu1 %v985_v36, %s836_s30  ;;  %306 = vrot.lane.b32.xlu2 %v985_v36, %s835_s29 }
 0x14a   :  { %320 = vrot.lane.b32.xlu0 %v983_v35, %s836_s30 }
 0x151   :  { %288 = vrot.lane.b32.xlu1 %v983_v35, %s838_s6  ;;  %272 = vrot.lane.b32.xlu2 %v983_v35, %s837_s5 }
 0x152   :  { %274 = vrot.lane.b32.xlu0 %v985_v36, %s837_s5 }
 0x159   :  { %290 = vrot.lane.b32.xlu2 %v985_v36, %s838_s6 }
 0x15a   :  { %436 = vperm.xlu0 %748, %v720_v5  }
 0x18b   :  { %v387_v39 = vpop.permute.xlu2 %386 }
 0x193   :  { %v357_v40 = vpop.permute.xlu2 %356 }
 0x19b   :  { %v339_v46 = vpop.permute.xlu2 %338 }
 0x1a3   :  { %v355_v44 = vpop.permute.xlu1 %354  ;;  %v307_v11 = vpop.permute.xlu2 %306 }
 0x1a4   :  { %v389_v45 = vpop.permute.xlu0 %388  ;;  %v358_v61 = vsel %vm148_vm1, %v355_v44, %v357_v40  ;;  %v359_v62 = vsel %vm148_vm1, %v357_v40, %v355_v44 }
 0x1a5   :  { %v390_v47 = vsel %vm184_vm2, %v387_v39, %v389_v45  ;;  %v391_v48 = vsel %vm184_vm2, %v389_v45, %v387_v39  ;;  %v366_v7 = vmul.f32 %v362_v55, %v358_v61  ;;  %v367_v8 = vmul.f32 %v363_v56, %v359_v62 }
 0x1a6   :  { %v398_v50 = vmul.f32 %v394_v42, %v390_v47  ;;  %v399_v51 = vmul.f32 %v395_v43, %v391_v48  ;;  %v713_v42 = vld [vmem:[%s1191_s1 + $0x2] sm:$0x3]  ;;  %v278_v43 = vld [vmem:[%s1191_s1] sm:$0x3] }
 0x1a7   :  { %v297_v47 = vperm.slane %v713_v42, 1  ;;  %v280_v48 = vperm.slane %v278_v43, 0  ;;  %v281_v49 = vperm.slane %v278_v43, 1 }
 0x1a8   :  { %v430_v53 = vpack.c.bf16 %v398_v50, %v398_v50  ;;  %v431_v54 = vpack.c.bf16 %v399_v51, %v399_v51 }
 0x1aa   :  { %v443_v57 = vsel %vm237_vm3, %v430_v53, 0  ;;  %v446_v58 = vsel %vm237_vm3, %v431_v54, 0 }
 0x1ab   :  { %451 = vmatpush.bf16.msra.mxu2 %v443_v57  ;;  %464 = vmatpush.bf16.msra.mxu3 %v446_v58  ;;  %v373_v63 = vpop.permute.xlu1 %372  ;;  %v273_v27 = vpop.permute.xlu2 %272 }
 0x1ac   :  { %v371_v2 = vpop.permute.xlu0 %370 }
 0x1ad   :  { %v374_v3 = vsel %vm166_vm0, %v371_v2, %v373_v63  ;;  %v375_v4 = vsel %vm166_vm0, %v373_v63, %v371_v2  ;;  %v403_v63 = vld [vmem:[#allocation6 + $0x4] sm:$0xf] }
 0x1ae   :  { %v382_v9 = vmul.f32 %v378_v59, %v374_v3  ;;  %v383_v10 = vmul.f32 %v379_v60, %v375_v4 }
 0x1b0   :  { %v428_v13 = vpack.c.bf16 %v382_v9, %v366_v7  ;;  %v429_v14 = vpack.c.bf16 %v383_v10, %v367_v8 }
 0x1b2   :  { %452 = vmatpush.bf16.msra.mxu2 %v428_v13  ;;  %465 = vmatpush.bf16.msra.mxu3 %v429_v14  ;;  %v729_v14 = vld [vmem:[%s1191_s1 + $0x10] sm:$0x3] }
 0x1b3   :  { %v305_v17 = vpop.permute.xlu1 %304  ;;  %v291_v50 = vpop.permute.xlu2 %290 }
 0x1b4   :  { %v341_v18 = vpop.permute.xlu0 %340  ;;  %v308_v32 = vsel %vm92_vm6, %v305_v17, %v307_v11  ;;  %v309_v33 = vsel %vm92_vm6, %v307_v11, %v305_v17 }
 0x1b5   :  { %v342_v19 = vsel %vm130_vm4, %v339_v46, %v341_v18  ;;  %v343_v20 = vsel %vm130_vm4, %v341_v18, %v339_v46  ;;  %v316_v38 = vmul.f32 %v312_v28, %v309_v33  ;;  %v317_v39 = vmul.f32 %v313_v29, %v308_v32  ;;  %v726_v32 = vld [vmem:[%s1191_s1 + $0xa] sm:$0x3] }
 0x1b6   :  { %v350_v21 = vmul.f32 %v346_v15, %v342_v19  ;;  %v351_v22 = vmul.f32 %v347_v16, %v343_v20  ;;  %v296_v46 = vperm.slane %v713_v42, 0  ;;  %v598_v15 = vperm.slane %v729_v14, 0 }
 0x1b7   :  { %v599_v16 = vperm.slane %v729_v14, 1 }
 0x1b8   :  { %v426_v25 = vpack.c.bf16 %v350_v21, %v983_v35  ;;  %v427_v26 = vpack.c.bf16 %v351_v22, %v985_v36 }
 0x1ba   :  { %453 = vmatpush.bf16.msra.mxu2 %v426_v25  ;;  %466 = vmatpush.bf16.msra.mxu3 %v427_v26 }
 0x1bb   :  { %v323_v34 = vpop.permute.xlu1 %322 }
 0x1bc   :  { %v321_v37 = vpop.permute.xlu0 %320 }
 0x1bd   :  { %v324_v35 = vsel %vm110_vm5, %v321_v37, %v323_v34  ;;  %v325_v36 = vsel %vm110_vm5, %v323_v34, %v321_v37 }
 0x1be   :  { %v332_v40 = vmul.f32 %v328_v30, %v325_v36  ;;  %v333_v41 = vmul.f32 %v329_v31, %v324_v35  ;;  %v727_v30 = vld [vmem:[%s1191_s1 + $0xc] sm:$0x3]  ;;  %v728_v31 = vld [vmem:[%s1191_s1 + $0xe] sm:$0x3] }
 0x1bf   :  { %v566_v34 = vperm.slane %v727_v30, 0  ;;  %v567_v37 = vperm.slane %v727_v30, 1  ;;  %v582_v35 = vperm.slane %v728_v31, 0  ;;  %v583_v36 = vperm.slane %v728_v31, 1 }
 0x1c0   :  { %v424_v44 = vpack.c.bf16 %v332_v40, %v316_v38  ;;  %v425_v45 = vpack.c.bf16 %v333_v41, %v317_v39  ;;  %v550_v40 = vperm.slane %v726_v32, 0  ;;  %v551_v41 = vperm.slane %v726_v32, 1 }
 0x1c2   :  { %454 = vmatpush.bf16.msra.mxu2 %v424_v44  ;;  %467 = vmatpush.bf16.msra.mxu3 %v425_v45 }
 0x1c3   :  { %v289_v51 = vpop.permute.xlu1 %288 }
 0x1c4   :  { %v292_v52 = vsel %vm74_vm8, %v289_v51, %v291_v50  ;;  %v293_v53 = vsel %vm74_vm8, %v291_v50, %v289_v51  ;;  %v275_v54 = vpop.permute.xlu0 %274 }
 0x1c5   :  { %v300_v55 = vmul.f32 %v296_v46, %v293_v53  ;;  %v301_v56 = vmul.f32 %v297_v47, %v292_v52  ;;  %v276_v57 = vsel %vm57_vm7, %v273_v27, %v275_v54  ;;  %v277_v58 = vsel %vm57_vm7, %v275_v54, %v273_v27 }
 0x1c6   :  { %v284_v59 = vmul.f32 %v280_v48, %v277_v58  ;;  %v285_v60 = vmul.f32 %v281_v49, %v276_v57 }
 0x1c8   :  { %v422_v61 = vpack.c.bf16 %v300_v55, %v284_v59  ;;  %v423_v62 = vpack.c.bf16 %v301_v56, %v285_v60  ;;  %v724_v60 = vld [vmem:[%s1191_s1 + $0x4] sm:$0x3] }
 0x1ca   :  { %455 = vmatpush.bf16.msra.mxu2 %v422_v61  ;;  %468 = vmatpush.bf16.msra.mxu3 %v423_v62  ;;  %v725_v61 = vld [vmem:[%s1191_s1 + $0x6] sm:$0x3] }
 0x1cc   :  { %v437_v2 = vpop.permute.xlu0 %436 }
 0x1cd   :  { %721 = vmatmul.msk.bf16.vlgmr.msra.gmra.mxu2 %vm233_vm9, %v403_v63  ;;  %722 = vmatmul.msk.bf16.vlgmr.msra.gmra.mxu3 %vm233_vm9, %v403_v63  ;;  %v516_v63 = vperm.slane %v724_v60, 0 }
 0x250   :  { %v457_v3 = vpop.f32.mrf.mxu2  ;;  %v470_v4 = vpop.f32.mrf.mxu3 }
 0x251   :  { %v458_v5 = vadd.f32 %v457_v3, %v437_v2  ;;  %v471_v7 = vadd.f32 %v470_v4, %v437_v2  ;;  %v517_v2 = vperm.slane %v724_v60, 1  ;;  %v532_v3 = vperm.slane %v725_v61, 0 }
 0x252   :  { %v533_v4 = vperm.slane %v725_v61, 1 }
 0x253   :  { %v1084_v8 = vmax.f32 %v458_v5, 0.0  ;;  %v1086_v9 = vmax.f32 %v471_v7, 0.0 }
 0x255   :  { %592 = vrot.lane.b32.xlu2 %v1086_v9, %s832_s27  ;;  %574 = vrot.lane.b32.xlu0 %v1084_v8, %s833_s2 }
 0x256   :  { %590 = vrot.lane.b32.xlu1 %v1084_v8, %s832_s27 }
 0x258   :  { %v459_v10 = vpop.f32.mrf.mxu2  ;;  %v472_v11 = vpop.f32.mrf.mxu3 }
 0x25d   :  { %560 = vrot.lane.b32.xlu2 %v1086_v9, %s831_s0  ;;  %544 = vrot.lane.b32.xlu0 %v1086_v9, %s834_s28 }
 0x25e   :  { %558 = vrot.lane.b32.xlu1 %v1084_v8, %s831_s0 }
 0x265   :  { %542 = vrot.lane.b32.xlu2 %v1084_v8, %s834_s28  ;;  %524 = vrot.lane.b32.xlu0 %v1084_v8, %s836_s30 }
 0x266   :  { %576 = vrot.lane.b32.xlu1 %v1086_v9, %s833_s2 }
 0x26d   :  { %510 = vrot.lane.b32.xlu2 %v1086_v9, %s835_s29  ;;  %478 = vrot.lane.b32.xlu0 %v1086_v9, %s837_s5 }
 0x26e   :  { %508 = vrot.lane.b32.xlu1 %v1084_v8, %s835_s29 }
 0x275   :  { %476 = vrot.lane.b32.xlu2 %v1084_v8, %s837_s5  ;;  %640 = vperm.xlu0 %748, %v730_v12  }
 0x276   :  { %526 = vrot.lane.b32.xlu1 %v1086_v9, %s836_s30 }
 0x27d   :  { %494 = vrot.lane.b32.xlu2 %v1086_v9, %s838_s6 }
 0x27e   :  { %492 = vrot.lane.b32.xlu1 %v1084_v8, %s838_s6 }
 0x2af   :  { %v593_v13 = vpop.permute.xlu2 %592 }
 0x2b7   :  { %v561_v17 = vpop.permute.xlu2 %560 }
 0x2bf   :  { %v543_v29 = vpop.permute.xlu2 %542 }
 0x2c7   :  { %v575_v23 = vpop.permute.xlu0 %574  ;;  %v511_v51 = vpop.permute.xlu2 %510 }
 0x2c8   :  { %v591_v18 = vpop.permute.xlu1 %590 }
 0x2c9   :  { %v594_v19 = vsel %vm184_vm2, %v591_v18, %v593_v13  ;;  %v595_v20 = vsel %vm184_vm2, %v593_v13, %v591_v18 }
 0x2ca   :  { %v602_v21 = vmul.f32 %v598_v15, %v594_v19  ;;  %v603_v22 = vmul.f32 %v599_v16, %v595_v20  ;;  %v482_v15 = vld [vmem:[%s1191_s1] sm:$0x3]  ;;  %v723_v16 = vld [vmem:[%s1191_s1 + $0x2] sm:$0x3]  ;;  %s840_s1 = smov [#allocation8]  }
 0x2cb   :  { %v484_v20 = vperm.slane %v482_v15, 0  ;;  %s691_s12 = sshll.u32 %s840_s1, 4  ;;  %s692_s12 = int_to_ptr.vmem [resolvable:$true] %s691_s12 }
 0x2cc   :  { %v634_v24 = vpack.c.bf16 %v602_v21, %v602_v21  ;;  %v635_v25 = vpack.c.bf16 %v603_v22, %v603_v22  ;;  %v485_v21 = vperm.slane %v482_v15, 1  ;;  %v500_v22 = vperm.slane %v723_v16, 0 }
 0x2ce   :  { %v647_v26 = vsel %vm237_vm3, %v634_v24, 0  ;;  %v650_v27 = vsel %vm237_vm3, %v635_v25, 0 }
 0x2cf   :  { %655 = vmatpush.bf16.msrb.mxu0 %v647_v26  ;;  %668 = vmatpush.bf16.msrb.mxu1 %v650_v27  ;;  %v545_v33 = vpop.permute.xlu0 %544  ;;  %v477_v62 = vpop.permute.xlu2 %476 }
 0x2d0   :  { %v559_v28 = vpop.permute.xlu1 %558  ;;  %v546_v43 = vsel %vm130_vm4, %v543_v29, %v545_v33  ;;  %v547_v44 = vsel %vm130_vm4, %v545_v33, %v543_v29 }
 0x2d1   :  { %v562_v38 = vsel %vm148_vm1, %v559_v28, %v561_v17  ;;  %v563_v39 = vsel %vm148_vm1, %v561_v17, %v559_v28  ;;  %v554_v52 = vmul.f32 %v550_v40, %v546_v43  ;;  %v555_v53 = vmul.f32 %v551_v41, %v547_v44 }
 0x2d2   :  { %v570_v47 = vmul.f32 %v566_v34, %v562_v38  ;;  %v571_v48 = vmul.f32 %v567_v37, %v563_v39 }
 0x2d3   :  { %v630_v57 = vpack.c.bf16 %v554_v52, %v1084_v8  ;;  %v631_v58 = vpack.c.bf16 %v555_v53, %v1086_v9 }
 0x2d7   :  { %v525_v59 = vpop.permute.xlu0 %524  ;;  %v495_v26 = vpop.permute.xlu2 %494 }
 0x2d8   :  { %v577_v42 = vpop.permute.xlu1 %576 }
 0x2d9   :  { %v578_v45 = vsel %vm166_vm0, %v575_v23, %v577_v42  ;;  %v579_v46 = vsel %vm166_vm0, %v577_v42, %v575_v23  ;;  %v501_v23 = vperm.slane %v723_v16, 1 }
 0x2da   :  { %v586_v49 = vmul.f32 %v582_v35, %v578_v45  ;;  %v587_v50 = vmul.f32 %v583_v36, %v579_v46  ;;  %v607_v35 = vld [vmem:[#allocation6 + $0x8] sm:$0xf] }
 0x2dc   :  { %v632_v54 = vpack.c.bf16 %v586_v49, %v570_v47  ;;  %v633_v55 = vpack.c.bf16 %v587_v50, %v571_v48 }
 0x2de   :  { %656 = vmatpush.bf16.msrb.mxu0 %v632_v54  ;;  %669 = vmatpush.bf16.msrb.mxu1 %v633_v55 }
 0x2df   :  { %v479_v17 = vpop.permute.xlu0 %478 }
 0x2e0   :  { %v509_v56 = vpop.permute.xlu1 %508  ;;  %v480_v24 = vsel %vm57_vm7, %v477_v62, %v479_v17  ;;  %v481_v25 = vsel %vm57_vm7, %v479_v17, %v477_v62 }
 0x2e1   :  { %v512_v5 = vsel %vm92_vm6, %v509_v56, %v511_v51  ;;  %v513_v7 = vsel %vm92_vm6, %v511_v51, %v509_v56  ;;  %v488_v30 = vmul.f32 %v484_v20, %v481_v25  ;;  %v489_v31 = vmul.f32 %v485_v21, %v480_v24 }
 0x2e2   :  { %657 = vmatpush.bf16.msrb.mxu0 %v630_v57  ;;  %670 = vmatpush.bf16.msrb.mxu1 %v631_v58  ;;  %v520_v11 = vmul.f32 %v516_v63, %v513_v7  ;;  %v521_v12 = vmul.f32 %v517_v2, %v512_v5 }
 0x2e7   :  { %v641_v36 = vpop.permute.xlu0 %640 }
 0x2e8   :  { %v527_v8 = vpop.permute.xlu1 %526 }
 0x2e9   :  { %v528_v9 = vsel %vm110_vm5, %v525_v59, %v527_v8  ;;  %v529_v10 = vsel %vm110_vm5, %v527_v8, %v525_v59 }
 0x2ea   :  { %v536_v13 = vmul.f32 %v532_v3, %v529_v10  ;;  %v537_v14 = vmul.f32 %v533_v4, %v528_v9 }
 0x2ec   :  { %v628_v18 = vpack.c.bf16 %v536_v13, %v520_v11  ;;  %v629_v19 = vpack.c.bf16 %v537_v14, %v521_v12 }
 0x2ee   :  { %658 = vmatpush.bf16.msrb.mxu0 %v628_v18  ;;  %671 = vmatpush.bf16.msrb.mxu1 %v629_v19 }
 0x2f0   :  { %v493_v27 = vpop.permute.xlu1 %492 }
 0x2f1   :  { %v496_v28 = vsel %vm74_vm8, %v493_v27, %v495_v26  ;;  %v497_v29 = vsel %vm74_vm8, %v495_v26, %v493_v27 }
 0x2f2   :  { %v504_v32 = vmul.f32 %v500_v22, %v497_v29  ;;  %v505_v33 = vmul.f32 %v501_v23, %v496_v28 }
 0x2f4   :  { %v626_v34 = vpack.c.bf16 %v504_v32, %v488_v30  ;;  %v627_v37 = vpack.c.bf16 %v505_v33, %v489_v31 }
 0x2f6   :  { %659 = vmatpush.bf16.msrb.mxu0 %v626_v34  ;;  %672 = vmatpush.bf16.msrb.mxu1 %v627_v37 }
 0x2f9   :  { %731 = vmatmul.msk.bf16.vlgmr.msrb.gmra.mxu0 %vm233_vm9, %v607_v35  ;;  %732 = vmatmul.msk.bf16.vlgmr.msrb.gmra.mxu1 %vm233_vm9, %v607_v35 }
 0x376   :  { %v661_v38 = vpop.f32.mrf.mxu0  ;;  %v674_v39 = vpop.f32.mrf.mxu1 }
 0x377   :  { %v662_v40 = vadd.f32 %v661_v38, %v641_v36  ;;  %v675_v41 = vadd.f32 %v674_v39, %v641_v36 }
 0x379   :  { %v680_v6 = vadd.f32 %v662_v40, %v872_v0  ;;  %v681_v42 = vadd.f32 %v675_v41, %v880_v1 }
 0x37b   :  { %v682_v43 = vmax.f32 %v680_v6, 0.0  ;;  %v683_v44 = vmax.f32 %v681_v42, 0.0 }
 0x37d   :  { %684 = vst [vmem:[#allocation8] sm:$0xff] %v682_v43 }
 0x37e   :  { %685 = vst [vmem:[#allocation8 + $0x8] sm:$0xff] %v683_v44  ;;  %v663_v45 = vpop.f32.mrf.mxu0  ;;  %v676_v46 = vpop.f32.mrf.mxu1 }
 0x37f   :  { %696 = dma.vmem_to_hbm [thread:$0]  %s692_s12, 256, %s694_s15, [#allocation5]  }
 0x380   :  { %825 = dma.done.wait [#allocation5], 256  }
 0x381   :  { %826 = vsyncadd [#allocation5], 4294967040 }
 0x382   :  { %701 = vsyncpa [#allocation4], 1 }
 0x383   :  { %702 = vsyncpa [#allocation7], 1 }
 0x384   :  { %703 = vsyncpa [#allocation5], 1 }

</bundles_post_ra>
